<compile_context>
chip_gen: v5e
topology: v5e:2x2
jax: 0.10.0
libtpu: 0.0.40
codegen_flags: <defaults>
</compile_context>

<pallas_src>
import functools

import jax
import jax.numpy as jnp
from jax.experimental import pallas as pl
from jax.experimental.pallas import tpu as pltpu

LANES = 128
SUBLANES = 8
MAX_TILE_M = 4096        # 4096*128*4 B = 2 MiB per f32 block; <=12 MiB live w/ double-buffering
_PAD_LOGIT = -1.0e4      # exp(-1e4) == 0.0 in f32 -> padded elements contribute exactly 0 loss


def _bce_with_logits(x, z, alpha):
    # Numerically-stable BCE with logits (matches torch's formulation):
    #   loss = max(x, 0) - x*z + log1p(exp(-|x|))
    loss = jnp.maximum(x, 0.0) - x * z + jnp.log1p(jnp.exp(-jnp.abs(x)))
    # alpha is validated to lie in [0, 1], so the module's `alpha >= 0` branch
    # always applies the class weighting.
    alpha_t = alpha * z + (1.0 - alpha) * (1.0 - z)
    return alpha_t * loss


def _wbce_partial_sum_kernel(pred_ref, tgt_ref, out_ref, *, alpha):
    x = pred_ref[...].astype(jnp.float32)
    z = tgt_ref[...].astype(jnp.float32)
    loss = _bce_with_logits(x, z, alpha)
    # (tile_m, 128) -> (tile_m//8, 8, 128) -> sum over leading dim: pure VPU
    # vreg adds, no per-step cross-lane (XLU) reduction and no scalar RMW.
    out_ref[...] = loss.reshape(-1, SUBLANES, LANES).sum(axis=0)


def _wbce_elementwise_kernel(pred_ref, tgt_ref, out_ref, *, alpha):
    x = pred_ref[...].astype(jnp.float32)
    z = tgt_ref[...].astype(jnp.float32)
    loss = _bce_with_logits(x, z, alpha)
    out_ref[...] = loss.astype(out_ref.dtype)


def weighted_bce_with_logits_loss(pred, target, *, alpha, reduction="mean"):
    """JAX/Pallas equivalent of WeightedBCEWithLogitsLoss(alpha, reduction)(pred, target)."""
    if not 0 <= alpha <= 1:
        raise ValueError("alpha must be between 0 and 1")
    orig_shape = pred.shape
    orig_dtype = pred.dtype
    n_elems = int(pred.size)

    # Pick the biggest tile height that the data needs, capped at MAX_TILE_M,
    # rounded to the sublane count (8) so (tile_m, 128) blocks are legal.
    rows_needed = pl.cdiv(n_elems, LANES)
    tile_m = min(MAX_TILE_M, ((rows_needed + SUBLANES - 1) // SUBLANES) * SUBLANES)
    pad_to = tile_m * LANES
    n_padded = ((n_elems + pad_to - 1) // pad_to) * pad_to
    n_pad = n_padded - n_elems

    flat_pred = pred.reshape(-1)
    flat_tgt = target.reshape(-1)
    if n_pad:
        # Pad pred with a very negative logit and target with 0 so the padded
        # loss is exactly zero -- no mask stream and no masking in-kernel.
        flat_pred = jnp.pad(flat_pred, (0, n_pad), constant_values=_PAD_LOGIT)
        flat_tgt = jnp.pad(flat_tgt, (0, n_pad), constant_values=0)

    M = n_padded // LANES
    n_tiles = M // tile_m
    pred2d = flat_pred.reshape(M, LANES)
    tgt2d = flat_tgt.reshape(M, LANES)

    if reduction in ("mean", "sum"):
        kernel = functools.partial(_wbce_partial_sum_kernel, alpha=float(alpha))
        partials = pl.pallas_call(
            kernel,
            out_shape=jax.ShapeDtypeStruct((n_tiles * SUBLANES, LANES), jnp.float32),
            grid=(n_tiles,),
            in_specs=[
                pl.BlockSpec((tile_m, LANES), lambda i: (i, 0)),
                pl.BlockSpec((tile_m, LANES), lambda i: (i, 0)),
            ],
            out_specs=pl.BlockSpec((SUBLANES, LANES), lambda i: (i, 0)),
            compiler_params=pltpu.CompilerParams(
                dimension_semantics=("parallel",),  # megacore-shards on v7x
            ),
        )(pred2d, tgt2d)
        total = jnp.sum(partials)  # single tiny cross-lane reduce, done in XLA
        if reduction == "mean":
            return total / jnp.float32(n_elems)
        return total
    else:  # reduction == 'none'
        kernel = functools.partial(_wbce_elementwise_kernel, alpha=float(alpha))
        loss2d = pl.pallas_call(
            kernel,
            out_shape=jax.ShapeDtypeStruct((M, LANES), orig_dtype),
            grid=(n_tiles,),
            in_specs=[
                pl.BlockSpec((tile_m, LANES), lambda i: (i, 0)),
                pl.BlockSpec((tile_m, LANES), lambda i: (i, 0)),
            ],
            out_specs=pl.BlockSpec((tile_m, LANES), lambda i: (i, 0)),
            compiler_params=pltpu.CompilerParams(
                dimension_semantics=("parallel",),
            ),
        )(pred2d, tgt2d)
        return loss2d.reshape(-1)[:n_elems].reshape(orig_shape)


def _reference(pred, target, alpha, reduction="mean"):
    x = pred.astype(jnp.float32)
    z = target.astype(jnp.float32)
    loss = jnp.maximum(x, 0.0) - x * z + jnp.log1p(jnp.exp(-jnp.abs(x)))
    loss = (alpha * z + (1 - alpha) * (1 - z)) * loss
    if reduction == "mean":
        return loss.mean()
    if reduction == "sum":
        return loss.sum()
    return loss.astype(pred.dtype)


if __name__ == "__main__":
    key = jax.random.PRNGKey(0)
    k1, k2 = jax.random.split(key)
    # pred: logits NCHW [2,4,16,16]; target: {0,1} labels, same shape.
    pred = jax.random.normal(k1, (2, 4, 16, 16), dtype=jnp.float32)
    target = (jax.random.uniform(k2, (2, 4, 16, 16)) > 0.5).astype(jnp.float32)
    alpha = 0.25

    # mean reduction
    out_mean = jax.block_until_ready(
        weighted_bce_with_logits_loss(pred, target, alpha=alpha, reduction="mean")
    )
    ref_mean = _reference(pred, target, alpha, reduction="mean")
    assert jnp.allclose(out_mean, ref_mean, rtol=1e-5, atol=1e-6), (out_mean, ref_mean)

    # sum reduction
    out_sum = jax.block_until_ready(
        weighted_bce_with_logits_loss(pred, target, alpha=alpha, reduction="sum")
    )
    ref_sum = _reference(pred, target, alpha, reduction="sum")
    assert jnp.allclose(out_sum, ref_sum, rtol=1e-5, atol=1e-5), (out_sum, ref_sum)

    # 'none' reduction
    out_none = jax.block_until_ready(
        weighted_bce_with_logits_loss(pred, target, alpha=alpha, reduction="none")
    )
    ref_none = _reference(pred, target, alpha, reduction="none")
    assert out_none.shape == pred.shape
    assert out_none.dtype == pred.dtype
    assert jnp.allclose(out_none, ref_none, rtol=1e-5, atol=1e-6)

    # Ragged-tail sanity check (exercises the negative-logit padding path).
    p3 = jax.random.normal(k1, (3, 5, 7), dtype=jnp.float32)
    t3 = (jax.random.uniform(k2, (3, 5, 7)) > 0.5).astype(jnp.float32)
    out3 = jax.block_until_ready(
        weighted_bce_with_logits_loss(p3, t3, alpha=alpha, reduction="mean")
    )
    assert jnp.allclose(out3, _reference(p3, t3, alpha, "mean"), rtol=1e-5, atol=1e-6)

    print("KERNEL_OK")
</pallas_src>

<mosaic_0001>
module attributes {stable_mosaic.version = 11 : i64} {
  func.func @_wbce_partial_sum_kernel(%arg0: i32, %arg1: memref<16x128xf32, #tpu.memory_space<vmem>>, %arg2: memref<16x128xf32, #tpu.memory_space<vmem>>, %arg3: memref<8x128xf32, #tpu.memory_space<vmem>>) attributes {dimension_semantics = [#tpu.dimension_semantics<parallel>], iteration_bounds = array<i64: 1>, scalar_prefetch = 0 : i64, scratch_operands = 0 : i64, tpu.core_type = #tpu.core_type<tc>, window_params = [{transform_indices = @transform_0, window_bounds = array<i64: 16, 128>}, {transform_indices = @transform_1, window_bounds = array<i64: 16, 128>}, {transform_indices = @transform_2, window_bounds = array<i64: 8, 128>}]} {
    %c0 = arith.constant 0 : index
    %c0_0 = arith.constant 0 : index
    %0 = vector.load %arg1[%c0, %c0_0] : memref<16x128xf32, #tpu.memory_space<vmem>>, vector<16x128xf32>
    %c0_1 = arith.constant 0 : index
    %c0_2 = arith.constant 0 : index
    %1 = vector.load %arg2[%c0_1, %c0_2] : memref<16x128xf32, #tpu.memory_space<vmem>>, vector<16x128xf32>
    %cst = arith.constant 0.000000e+00 : f32
    %2 = vector.broadcast %cst : f32 to vector<16x128xf32>
    %3 = arith.maximumf %0, %2 : vector<16x128xf32>
    %4 = arith.mulf %0, %1 : vector<16x128xf32>
    %5 = arith.subf %3, %4 : vector<16x128xf32>
    %6 = math.absf %0 : vector<16x128xf32>
    %cst_3 = arith.constant 0.000000e+00 : f32
    %7 = vector.broadcast %cst_3 : f32 to vector<16x128xf32>
    %8 = arith.subf %7, %6 : vector<16x128xf32>
    %9 = math.exp %8 : vector<16x128xf32>
    %10 = math.log1p %9 : vector<16x128xf32>
    %11 = arith.addf %5, %10 : vector<16x128xf32>
    %cst_4 = arith.constant 2.500000e-01 : f32
    %12 = vector.broadcast %cst_4 : f32 to vector<16x128xf32>
    %13 = arith.mulf %12, %1 : vector<16x128xf32>
    %cst_5 = arith.constant 1.000000e+00 : f32
    %14 = vector.broadcast %cst_5 : f32 to vector<16x128xf32>
    %15 = arith.subf %14, %1 : vector<16x128xf32>
    %cst_6 = arith.constant 7.500000e-01 : f32
    %16 = vector.broadcast %cst_6 : f32 to vector<16x128xf32>
    %17 = arith.mulf %16, %15 : vector<16x128xf32>
    %18 = arith.addf %13, %17 : vector<16x128xf32>
    %19 = arith.mulf %18, %11 : vector<16x128xf32>
    %20 = vector.shape_cast %19 : vector<16x128xf32> to vector<2x8x128xf32>
    %cst_7 = arith.constant dense<0.000000e+00> : vector<8x128xf32>
    %21 = vector.multi_reduction <add>, %20, %cst_7 [0] : vector<2x8x128xf32> to vector<8x128xf32>
    %c0_8 = arith.constant 0 : index
    %c0_9 = arith.constant 0 : index
    %22 = vector.load %arg3[%c0_8, %c0_9] : memref<8x128xf32, #tpu.memory_space<vmem>>, vector<8x128xf32>
    tpu.vector_store %arg3[%c0_8, %c0_9], %21 {strides = array<i32>} : memref<8x128xf32, #tpu.memory_space<vmem>>, vector<8x128xf32>,
    return
  }
  func.func @transform_0(%arg0: i32) -> (i32, i32) {
    %c0_i32 = arith.constant 0 : i32
    %c0_i32_0 = arith.constant 0 : i32
    return %arg0, %c0_i32 : i32, i32
  }
  func.func @transform_1(%arg0: i32) -> (i32, i32) {
    %c0_i32 = arith.constant 0 : i32
    %c0_i32_0 = arith.constant 0 : i32
    return %arg0, %c0_i32 : i32, i32
  }
  func.func @transform_2(%arg0: i32) -> (i32, i32) {
    %c0_i32 = arith.constant 0 : i32
    %c0_i32_0 = arith.constant 0 : i32
    return %arg0, %c0_i32 : i32, i32
  }
}

</mosaic_0001>

<bundles_post_ra>
// kernel: tpu_custom_call.1
= control target key start
LH: loop header
LB: loop body
LE: loop exit
PB: predicated region body
PF: predicated region fallthrough
CT: control target
= control target key end

     0   :  { %7 = vsyncpa [#allocation3], 0  ;;  %s232_s0 = inlined_call_operand.hbm [shape: f32[16,128], index: 0, kind: input, shape index: {}]   ;;  %s233_s1 = inlined_call_operand.hbm [shape: f32[16,128], index: 1, kind: input, shape index: {}]   ;;  %s234_s2 = inlined_call_operand.hbm [shape: f32[8,128], index: 2, kind: output, shape index: {}]  }
   0x1   :  { %8 = vsyncpa [#allocation6], 0 }
   0x2   :  { %9 = vsyncpa [#allocation4], 0  ;;  %s14_s11 = sshll.u32 %s232_s0, 4  ;;  %s203_s12 = smov [#allocation2]   ;;  %s15_s11 = int_to_ptr.hbm [resolvable:$true] %s14_s11 }
   0x3   :  { %s16_s13 = sshll.u32 %s203_s12, 4  ;;  %s27_s16 = sshll.u32 %s233_s1, 4  ;;  %s17_s13 = int_to_ptr.vmem [resolvable:$true] %s16_s13  ;;  %s28_s16 = int_to_ptr.hbm [resolvable:$true] %s27_s16 }
   0x4   :  { %s204_s17 = smov 128   ;;  %s205_s18 = smov 8  }
   0x5   :  { %22 = dma.hbm_to_vmem [thread:$0]  %s15_s11, 256, %s17_s13, [#allocation3], %s204_s17, %s204_s17, %s205_s18  }
   0x6   :  { %s206_s19 = smov [#allocation5]  }
   0x7   :  { %s29_s20 = sshll.u32 %s206_s19, 4  ;;  %s30_s20 = int_to_ptr.vmem [resolvable:$true] %s29_s20 }
   0x8   :  { %35 = dma.hbm_to_vmem [thread:$0]  %s28_s16, 256, %s30_s20, [#allocation6], %s204_s17, %s204_s17, %s205_s18  }
   0x9   :  { %197 = dma.done.wait [#allocation3], 256  }
   0xa   :  { %198 = vsyncadd [#allocation3], 4294967040 }
   0xb   :  { %199 = dma.done.wait [#allocation6], 256  }
   0xc   :  { %200 = vsyncadd [#allocation6], 4294967040  ;;  %v44_v0 = vld [vmem:[#allocation2] sm:$0xff]  ;;  %v45_v1 = vld [vmem:[#allocation2 + $0x8] sm:$0xff]  ;;  %s207_s0 = smov [#allocation7]   ;;  %s101_s23 = sshll.u32 %s234_s2, 4  ;;  %s102_s23 = int_to_ptr.hbm [resolvable:$true] %s101_s23 }
   0xd   :  { %v54_v2 = vand.u32 2147483647, %v44_v0  ;;  %v55_v3 = vand.u32 2147483647, %v45_v1  ;;  %v46_v9 = vld [vmem:[#allocation5] sm:$0xff]  ;;  %v47_v11 = vld [vmem:[#allocation5 + $0x8] sm:$0xff] }
   0xe   :  { %v84_v16 = vsub.f32 1.0, %v46_v9  ;;  %v85_v18 = vsub.f32 1.0, %v47_v11  ;;  %v48_v19 = vmax.f32 %v44_v0, 0.0  ;;  %v50_v20 = vmul.f32 %v46_v9, %v44_v0  ;;  %s99_s1 = sshll.u32 %s207_s0, 4  ;;  %s100_s1 = int_to_ptr.vmem [resolvable:$true] %s99_s1 }
   0xf   :  { %v56_v4 = vsub.f32 0.0, %v54_v2  ;;  %v57_v5 = vsub.f32 0.0, %v55_v3  ;;  %v49_v23 = vmax.f32 %v45_v1, 0.0  ;;  %v51_v24 = vmul.f32 %v47_v11, %v45_v1 }
  0x10   :  { %v82_v26 = vmul.f32 0.25, %v46_v9  ;;  %v86_v27 = vmul.f32 0.75, %v84_v16  ;;  %v83_v29 = vmul.f32 0.25, %v47_v11  ;;  %v87_v30 = vmul.f32 0.75, %v85_v18 }
  0x11   :  { %v58_v6 = vmul.f32 1.442695, %v56_v4  ;;  %v60_v7 = vmul.f32 1.442695, %v57_v5  ;;  %v52_v32 = vsub.f32 %v48_v19, %v50_v20  ;;  %v53_v35 = vsub.f32 %v49_v23, %v51_v24 }
  0x12   :  { %v88_v38 = vadd.f32 %v86_v27, %v82_v26  ;;  %v89_v40 = vadd.f32 %v87_v30, %v83_v29 }
  0x13   :  { %117 = vpow2.f32 %v58_v6 }
  0x14   :  { %119 = vpow2.f32 %v60_v7 }
  0x19   :  { %v118_v8 = vpop.eup %117 }
  0x1a   :  { %v120_v10 = vpop.eup %119  ;;  %v62_v12 = vadd.f32 1.0, %v118_v8  ;;  %v65_v13 = vmul.f32 -0.5, %v118_v8  ;;  %v68_v21 = vand.u32 2147483647, %v118_v8 }
  0x1b   :  { %v71_v14 = vadd.f32 1.0, %v120_v10  ;;  %v74_v15 = vmul.f32 -0.5, %v120_v10  ;;  %v77_v25 = vand.u32 2147483647, %v120_v10 }
  0x1c   :  { %121 = vlog2.f32 %v62_v12  ;;  %v66_v17 = vadd.f32 1.0, %v65_v13  ;;  %vm69_vm0 = vcmp.lt.f32.partialorder %v68_v21, 0.0004427343 }
  0x1d   :  { %123 = vlog2.f32 %v71_v14  ;;  %v75_v22 = vadd.f32 1.0, %v74_v15  ;;  %vm78_vm1 = vcmp.lt.f32.partialorder %v77_v25, 0.0004427343 }
  0x1e   :  { %v67_v28 = vmul.f32 %v118_v8, %v66_v17 }
  0x1f   :  { %v76_v33 = vmul.f32 %v120_v10, %v75_v22 }
  0x22   :  { %v122_v31 = vpop.eup %121 }
  0x23   :  { %v124_v34 = vpop.eup %123  ;;  %v64_v36 = vmul.f32 0.6931472, %v122_v31 }
  0x24   :  { %v73_v37 = vmul.f32 0.6931472, %v124_v34 }
  0x25   :  { %v70_v39 = vsel %vm69_vm0, %v67_v28, %v64_v36 }
  0x26   :  { %v79_v41 = vsel %vm78_vm1, %v76_v33, %v73_v37  ;;  %v80_v42 = vadd.f32 %v70_v39, %v52_v32 }
  0x27   :  { %v81_v43 = vadd.f32 %v79_v41, %v53_v35 }
  0x28   :  { %v90_v44 = vmul.f32 %v88_v38, %v80_v42 }
  0x29   :  { %v91_v45 = vmul.f32 %v89_v40, %v81_v43 }
  0x2b   :  { %v92_v46 = vadd.f32 %v91_v45, %v90_v44 }
  0x2d   :  { %93 = vst [vmem:[#allocation7] sm:$0xff] %v92_v46 }
  0x2e   :  { %104 = dma.vmem_to_hbm [thread:$0]  %s100_s1, 128, %s102_s23, [#allocation4]  }
  0x2f   :  { %201 = dma.done.wait [#allocation4], 128  }
  0x30   :  { %202 = vsyncadd [#allocation4], 4294967168 }
  0x31   :  { %109 = vsyncpa [#allocation3], 1 }
  0x32   :  { %110 = vsyncpa [#allocation6], 1 }
  0x33   :  { %111 = vsyncpa [#allocation4], 1 }

</bundles_post_ra>
